<compile_context>
chip_gen: v7x
topology: tpu7x:2x2x1
jax: 0.10.0
libtpu: 0.0.40
codegen_flags: <defaults>
</compile_context>

<pallas_src>
import jax
import jax.numpy as jnp
from jax.experimental import pallas as pl
from jax.experimental.pallas import tpu as pltpu

_MIB = 1024 * 1024


def _round_up(a, m):
    return (a + m - 1) // m * m


def _vmem_capacity_bytes():
    """Physical per-core VMEM; falls back to 128 MiB if the query fails."""
    try:
        info = pltpu.get_tpu_info()
        return int(getattr(info, "vmem_capacity_bytes", 128 * _MIB))
    except Exception:
        return 128 * _MIB


def _vmem_budget_bytes(phys):
    # Leave headroom for Mosaic-internal scratch.
    if phys <= 80 * _MIB:      # v7x-class: 64 MiB per TensorCore
        return 52 * _MIB
    return 100 * _MIB          # v5e / v6e: 128 MiB physical


# ----------------------------- kernels ------------------------------------- #

def _ffn_resident_kernel(x_ref, w1_ref, b1_ref, w2_ref, b2_ref, o_ref):
    # Weights fully resident in VMEM; one row tile per grid step.
    h = jnp.dot(x_ref[...], w1_ref[...], preferred_element_type=jnp.float32)
    h = jnp.maximum(h + b1_ref[...], 0.0)
    y = jnp.dot(h.astype(w2_ref.dtype), w2_ref[...],
                preferred_element_type=jnp.float32)
    o_ref[...] = (y + b2_ref[...]).astype(o_ref.dtype)


def _ffn_streamed_kernel(x_ref, w1_ref, b1_ref, w2_ref, b2_ref, o_ref, acc_ref):
    # Grid: (i over row tiles ["parallel"], j over hidden chunks ["arbitrary"]).
    # acc_ref: (tm, Dp) f32 VMEM accumulator, persists across the j loop.
    j = pl.program_id(1)

    @pl.when(j == 0)
    def _():
        acc_ref[...] = jnp.zeros_like(acc_ref)

    # linear1 chunk + bias + ReLU (elementwise over H, so chunking is exact).
    h = jnp.dot(x_ref[...], w1_ref[...], preferred_element_type=jnp.float32)
    h = jnp.maximum(h + b1_ref[...], 0.0)

    # linear2 chunk: accumulate partial sums over the hidden dimension.
    acc_ref[...] += jnp.dot(h.astype(w2_ref.dtype), w2_ref[...],
                            preferred_element_type=jnp.float32)

    @pl.when(j == pl.num_programs(1) - 1)
    def _():
        o_ref[...] = (acc_ref[...] + b2_ref[...]).astype(o_ref.dtype)


# ----------------------------- wrappers ------------------------------------ #

def prepare_params(w1, b1, w2, b2, *, th=256, compute_dtype=jnp.bfloat16):
    """Pre-cast / pre-pad FFN parameters once (hoisted out of the hot path).

    w1: [D, H] (= torch linear1.weight.T), b1: [H]
    w2: [H, D] (= torch linear2.weight.T), b2: [D]
    th: hidden-dim chunk used by the streamed path (Hp padded to a multiple).
    """
    D, H = w1.shape
    assert w2.shape == (H, D) and b1.shape == (H,) and b2.shape == (D,)
    Dp = _round_up(D, 128)                                # lane-dense embed dim
    th_eff = _round_up(min(th, _round_up(H, 128)), 128)   # hidden chunk (>=128)
    Hp = _round_up(H, th_eff)

    w1p = jnp.pad(w1.astype(compute_dtype), ((0, Dp - D), (0, Hp - H)))
    w2p = jnp.pad(w2.astype(compute_dtype), ((0, Hp - H), (0, Dp - D)))
    b1p = jnp.pad(b1.astype(jnp.float32).reshape(1, H), ((0, 0), (0, Hp - H)))
    b2p = jnp.pad(b2.astype(jnp.float32).reshape(1, D), ((0, 0), (0, Dp - D)))
    return dict(w1=w1p, b1=b1p, w2=w2p, b2=b2p, D=D, H=H, Dp=Dp, Hp=Hp,
                th=th_eff, compute_dtype=compute_dtype)


def _maybe_single_buffered_spec(shape, index_map):
    """BlockSpec with buffer_count=1 (grid-invariant block), if supported."""
    if hasattr(pl, "Buffered"):
        try:
            return pl.BlockSpec(shape, index_map, pipeline_mode=pl.Buffered(1))
        except Exception:
            pass
    return pl.BlockSpec(shape, index_map)


def _streamed_vmem_bytes(tm, th, Dp, out_isize):
    # Conservative: assume x / b2 end up double-buffered (fallback path) and
    # include the f32 hidden intermediate + its bf16 copy + compiler scratch.
    return (2 * tm * Dp * 2              # x tile (bf16)
            + 2 * Dp * th * 2            # w1 chunk (bf16, double-buffered)
            + 2 * th * Dp * 2            # w2 chunk
            + 2 * th * 4 + 2 * Dp * 4    # b1 chunk / b2 (f32)
            + 2 * tm * Dp * out_isize    # output tile
            + tm * Dp * 4                # f32 accumulator scratch
            + tm * th * 6                # h (f32) + bf16 copy for 2nd matmul
            + 4 * _MIB)                  # Mosaic-internal scratch headroom


def _resident_vmem_bytes(tm, Dp, Hp, out_isize):
    return (2 * tm * Dp * 2              # x tile
            + 2 * Dp * Hp * 2            # w1 (buffer pair, DMA'd once)
            + 2 * Hp * Dp * 2            # w2
            + 2 * (Hp + Dp) * 4          # biases
            + 2 * tm * Dp * out_isize    # output tile
            + tm * Hp * 6                # h (f32) + bf16 copy
            + 4 * _MIB)


def feed_forward(x, params, *, tm=512, force_stream=False):
    """x: [B, S, D] -> [B, S, D], with params from prepare_params()."""
    B, S, D = x.shape
    assert D == params["D"]
    Dp, Hp, th = params["Dp"], params["Hp"], params["th"]
    out_dtype = x.dtype
    out_isize = jnp.dtype(out_dtype).itemsize
    compute_dtype = params["compute_dtype"]

    M = B * S
    phys = _vmem_capacity_bytes()
    budget = _vmem_budget_bytes(phys)

    # ---- Row tile: as big as the VMEM budget allows (weight reuse ~ tm
    # FLOP/byte of weight traffic), clamped to the problem size. ----
    rows = _round_up(max(M, 16), 8)
    tm_eff = _round_up(min(tm, rows), 8)
    if phys <= 80 * _MIB and rows >= 256:
        # v7x: 2 TensorCores share the "parallel" row axis -> keep >=2 tiles.
        tm_eff = min(tm_eff, _round_up(-(-rows // 2), 8))
    while tm_eff > 128 and _streamed_vmem_bytes(tm_eff, th, Dp, out_isize) > budget:
        tm_eff = _round_up(tm_eff // 2, 8)
    Mp = _round_up(M, tm_eff)

    # ---- Pad / cast activations only (weights were prepared up front). ----
    x2d = jnp.pad(x.reshape(M, D).astype(compute_dtype),
                  ((0, Mp - M), (0, Dp - D)))
    w1p, b1p, w2p, b2p = params["w1"], params["b1"], params["w2"], params["b2"]

    use_resident = (not force_stream) and (
        _resident_vmem_bytes(tm_eff, Dp, Hp, out_isize) <= budget)

    if use_resident:
        # Fast path: weights stay resident in VMEM; 1-D grid over row tiles.
        out2d = pl.pallas_call(
            _ffn_resident_kernel,
            out_shape=jax.ShapeDtypeStruct((Mp, Dp), out_dtype),
            grid_spec=pltpu.PrefetchScalarGridSpec(
                num_scalar_prefetch=0,
                grid=(Mp // tm_eff,),
                in_specs=[
                    pl.BlockSpec((tm_eff, Dp), lambda i: (i, 0)),  # x rows
                    pl.BlockSpec((Dp, Hp), lambda i: (0, 0)),      # w1 resident
                    pl.BlockSpec((1, Hp), lambda i: (0, 0)),       # b1
                    pl.BlockSpec((Hp, Dp), lambda i: (0, 0)),      # w2 resident
                    pl.BlockSpec((1, Dp), lambda i: (0, 0)),       # b2
                ],
                out_specs=pl.BlockSpec((tm_eff, Dp), lambda i: (i, 0)),
            ),
            compiler_params=pltpu.CompilerParams(
                dimension_semantics=("parallel",),
                vmem_limit_bytes=budget,
            ),
        )(x2d, w1p, b1p, w2p, b2p)
    else:
        def call_streamed(single_buffer_invariants):
            if single_buffer_invariants:
                x_spec = _maybe_single_buffered_spec((tm_eff, Dp),
                                                     lambda i, j: (i, 0))
                b2_spec = _maybe_single_buffered_spec((1, Dp),
                                                      lambda i, j: (0, 0))
            else:
                x_spec = pl.BlockSpec((tm_eff, Dp), lambda i, j: (i, 0))
                b2_spec = pl.BlockSpec((1, Dp), lambda i, j: (0, 0))
            return pl.pallas_call(
                _ffn_streamed_kernel,
                out_shape=jax.ShapeDtypeStruct((Mp, Dp), out_dtype),
                grid_spec=pltpu.PrefetchScalarGridSpec(
                    num_scalar_prefetch=0,
                    grid=(Mp // tm_eff, Hp // th),
                    in_specs=[
                        x_spec,                                        # x (j-invariant)
                        pl.BlockSpec((Dp, th), lambda i, j: (0, j)),   # w1 chunk
                        pl.BlockSpec((1, th), lambda i, j: (0, j)),    # b1 chunk
                        pl.BlockSpec((th, Dp), lambda i, j: (j, 0)),   # w2 chunk
                        b2_spec,                                       # b2 (invariant)
                    ],
                    out_specs=pl.BlockSpec((tm_eff, Dp), lambda i, j: (i, 0)),
                    scratch_shapes=[pltpu.VMEM((tm_eff, Dp), jnp.float32)],
                ),
                compiler_params=pltpu.CompilerParams(
                    dimension_semantics=("parallel", "arbitrary"),
                    vmem_limit_bytes=budget,
                ),
            )(x2d, w1p, b1p, w2p, b2p)

        try:
            out2d = call_streamed(True)
        except Exception:
            # Fallback if this JAX build rejects pl.Buffered(1) on inputs.
            out2d = call_streamed(False)

    return out2d[:M, :D].reshape(B, S, D)


def init_params(key, embed_dim, expand_ratio):
    """Deterministic synthetic params matching nn.Linear init / shapes.

    torch: linear1.weight (H, D), linear1.bias (H,)
           linear2.weight (D, H), linear2.bias (D,)
    Weights are stored transposed ([in, out]) for the kernel.
    """
    H = embed_dim * expand_ratio
    k1, k2, k3, k4 = jax.random.split(key, 4)
    s1 = 1.0 / jnp.sqrt(embed_dim)
    s2 = 1.0 / jnp.sqrt(H)
    w1 = jax.random.uniform(k1, (embed_dim, H), jnp.float32, -s1, s1)  # linear1.weight.T
    b1 = jax.random.uniform(k2, (H,), jnp.float32, -s1, s1)
    w2 = jax.random.uniform(k3, (H, embed_dim), jnp.float32, -s2, s2)  # linear2.weight.T
    b2 = jax.random.uniform(k4, (embed_dim,), jnp.float32, -s2, s2)
    return w1, b1, w2, b2


if __name__ == "__main__":
    key = jax.random.PRNGKey(0)
    kx, kp, kx2, kp2 = jax.random.split(key, 4)

    # --- Small default test (hits the resident-weight fast path). ---
    batch, seq, embed_dim, expand_ratio = 2, 8, 32, 4
    x = jax.random.normal(kx, (batch, seq, embed_dim), jnp.float32)
    w1, b1, w2, b2 = init_params(kp, embed_dim, expand_ratio)
    params = prepare_params(w1, b1, w2, b2)

    out = jax.block_until_ready(feed_forward(x, params))
    ref = jnp.maximum(x @ w1 + b1, 0.0) @ w2 + b2
    assert out.shape == (batch, seq, embed_dim)
    assert jnp.allclose(out, ref, atol=3e-2, rtol=3e-2), (
        float(jnp.max(jnp.abs(out - ref))))

    # --- Also exercise the streamed (hidden-chunked accumulator) path. ---
    b_s, s_s, d_s, e_s = 2, 64, 128, 4
    x_s = jax.random.normal(kx2, (b_s, s_s, d_s), jnp.float32)
    w1s, b1s, w2s, b2s = init_params(kp2, d_s, e_s)
    params_s = prepare_params(w1s, b1s, w2s, b2s, th=128)
    out_s = jax.block_until_ready(
        feed_forward(x_s, params_s, tm=64, force_stream=True))
    ref_s = jnp.maximum(x_s @ w1s + b1s, 0.0) @ w2s + b2s
    assert jnp.allclose(out_s, ref_s, atol=3e-2, rtol=3e-2), (
        float(jnp.max(jnp.abs(out_s - ref_s))))

    print("KERNEL_OK")
</pallas_src>

<mosaic_0001>
module attributes {stable_mosaic.version = 11 : i64} {
  func.func @_ffn_resident_kernel(%arg0: i32, %arg1: memref<16x128xbf16, #tpu.memory_space<vmem>>, %arg2: memref<128x128xbf16, #tpu.memory_space<vmem>>, %arg3: memref<1x128xf32, #tpu.memory_space<vmem>>, %arg4: memref<128x128xbf16, #tpu.memory_space<vmem>>, %arg5: memref<1x128xf32, #tpu.memory_space<vmem>>, %arg6: memref<16x128xf32, #tpu.memory_space<vmem>>) attributes {dimension_semantics = [#tpu.dimension_semantics<parallel>], iteration_bounds = array<i64: 1>, scalar_prefetch = 0 : i64, scratch_operands = 0 : i64, tpu.core_type = #tpu.core_type<tc>, window_params = [{transform_indices = @transform_0, window_bounds = array<i64: 16, 128>}, {pipeline_mode = #tpu.pipeline_mode<synchronous>, transform_indices = @transform_1, window_bounds = array<i64: 128, 128>}, {pipeline_mode = #tpu.pipeline_mode<synchronous>, transform_indices = @transform_2, window_bounds = array<i64: 1, 128>}, {pipeline_mode = #tpu.pipeline_mode<synchronous>, transform_indices = @transform_3, window_bounds = array<i64: 128, 128>}, {pipeline_mode = #tpu.pipeline_mode<synchronous>, transform_indices = @transform_4, window_bounds = array<i64: 1, 128>}, {transform_indices = @transform_5, window_bounds = array<i64: 16, 128>}]} {
    %c0 = arith.constant 0 : index
    %c0_0 = arith.constant 0 : index
    %0 = vector.load %arg1[%c0, %c0_0] : memref<16x128xbf16, #tpu.memory_space<vmem>>, vector<16x128xbf16>
    %c0_1 = arith.constant 0 : index
    %c0_2 = arith.constant 0 : index
    %1 = vector.load %arg2[%c0_1, %c0_2] : memref<128x128xbf16, #tpu.memory_space<vmem>>, vector<128x128xbf16>
    %cst = arith.constant dense<0.000000e+00> : vector<16x128xf32>
    %2 = tpu.matmul %0, %1, %cst {dimension_numbers = #tpu.dot_dimension_numbers<[1], [0], [0], [1], [0, 0, 1, 1], [], []>} : vector<16x128xbf16>, vector<128x128xbf16>, vector<16x128xf32> -> vector<16x128xf32>
    %c0_3 = arith.constant 0 : index
    %c0_4 = arith.constant 0 : index
    %3 = vector.load %arg3[%c0_3, %c0_4] : memref<1x128xf32, #tpu.memory_space<vmem>>, vector<1x128xf32>
    %4 = vector.broadcast %3 : vector<1x128xf32> to vector<16x128xf32>
    %5 = arith.addf %2, %4 : vector<16x128xf32>
    %cst_5 = arith.constant 0.000000e+00 : f32
    %6 = vector.broadcast %cst_5 : f32 to vector<16x128xf32>
    %7 = arith.maximumf %5, %6 : vector<16x128xf32>
    %8 = arith.truncf %7 : vector<16x128xf32> to vector<16x128xbf16>
    %c0_6 = arith.constant 0 : index
    %c0_7 = arith.constant 0 : index
    %9 = vector.load %arg4[%c0_6, %c0_7] : memref<128x128xbf16, #tpu.memory_space<vmem>>, vector<128x128xbf16>
    %cst_8 = arith.constant dense<0.000000e+00> : vector<16x128xf32>
    %10 = tpu.matmul %8, %9, %cst_8 {dimension_numbers = #tpu.dot_dimension_numbers<[1], [0], [0], [1], [0, 0, 1, 1], [], []>} : vector<16x128xbf16>, vector<128x128xbf16>, vector<16x128xf32> -> vector<16x128xf32>
    %c0_9 = arith.constant 0 : index
    %c0_10 = arith.constant 0 : index
    %11 = vector.load %arg5[%c0_9, %c0_10] : memref<1x128xf32, #tpu.memory_space<vmem>>, vector<1x128xf32>
    %12 = vector.broadcast %11 : vector<1x128xf32> to vector<16x128xf32>
    %13 = arith.addf %10, %12 : vector<16x128xf32>
    %c0_11 = arith.constant 0 : index
    %c0_12 = arith.constant 0 : index
    %14 = vector.load %arg6[%c0_11, %c0_12] : memref<16x128xf32, #tpu.memory_space<vmem>>, vector<16x128xf32>
    tpu.vector_store %arg6[%c0_11, %c0_12], %13 {strides = array<i32>} : memref<16x128xf32, #tpu.memory_space<vmem>>, vector<16x128xf32>,
    return
  }
  func.func @transform_0(%arg0: i32) -> (i32, i32) {
    %c0_i32 = arith.constant 0 : i32
    %c0_i32_0 = arith.constant 0 : i32
    return %arg0, %c0_i32 : i32, i32
  }
  func.func @transform_1(%arg0: i32) -> (i32, i32) {
    %c0_i32 = arith.constant 0 : i32
    %c0_i32_0 = arith.constant 0 : i32
    %c0_i32_1 = arith.constant 0 : i32
    return %c0_i32, %c0_i32_0 : i32, i32
  }
  func.func @transform_2(%arg0: i32) -> (i32, i32) {
    %c0_i32 = arith.constant 0 : i32
    %c0_i32_0 = arith.constant 0 : i32
    %c0_i32_1 = arith.constant 0 : i32
    return %c0_i32, %c0_i32_0 : i32, i32
  }
  func.func @transform_3(%arg0: i32) -> (i32, i32) {
    %c0_i32 = arith.constant 0 : i32
    %c0_i32_0 = arith.constant 0 : i32
    %c0_i32_1 = arith.constant 0 : i32
    return %c0_i32, %c0_i32_0 : i32, i32
  }
  func.func @transform_4(%arg0: i32) -> (i32, i32) {
    %c0_i32 = arith.constant 0 : i32
    %c0_i32_0 = arith.constant 0 : i32
    %c0_i32_1 = arith.constant 0 : i32
    return %c0_i32, %c0_i32_0 : i32, i32
  }
  func.func @transform_5(%arg0: i32) -> (i32, i32) {
    %c0_i32 = arith.constant 0 : i32
    %c0_i32_0 = arith.constant 0 : i32
    return %arg0, %c0_i32 : i32, i32
  }
}

</mosaic_0001>

<bundles_post_ra>
// kernel: tpu_custom_call.1
= control target key start
LH: loop header
LB: loop body
LE: loop exit
PB: predicated region body
PF: predicated region fallthrough
CT: control target
= control target key end

     0   :  { %10 = vsyncpa [#allocation3], 0  ;;  %s718_s0 = inlined_call_operand.hbm [shape: bf16[16,128], index: 0, kind: input, shape index: {}]   ;;  %s719_s1 = inlined_call_operand.hbm [shape: bf16[128,128], index: 1, kind: input, shape index: {}]   ;;  %s720_s2 = inlined_call_operand.hbm [shape: f32[1,128], index: 2, kind: input, shape index: {}]   ;;  %s721_s3 = inlined_call_operand.hbm [shape: bf16[128,128], index: 3, kind: input, shape index: {}]   ;;  %s722_s4 = inlined_call_operand.hbm [shape: f32[1,128], index: 4, kind: input, shape index: {}]   ;;  %s723_s5 = inlined_call_operand.hbm [shape: f32[16,128], index: 5, kind: output, shape index: {}]  }
   0x1   :  { %11 = vsyncpa [#allocation6], 0 }
   0x2   :  { %12 = vsyncpa [#allocation9], 0 }
   0x3   :  { %13 = vsyncpa [#allocation4], 0  ;;  %s588_s18 = smov [#allocation5]   ;;  %s589_s20 = smov [#allocation8]  }
   0x4   :  { %s31_s19 = sshll.u32 %s588_s18, 4  ;;  %s53_s21 = sshll.u32 %s589_s20, 4  ;;  %s32_s19 = int_to_ptr.vmem [resolvable:$true] %s31_s19  ;;  %s630_s21 = int_to_ptr.vmem [resolvable:$true] %s53_s21 }
   0x5   :  { %s448_s24 = scalar_lea.hbm %s719_s1, 1024 }
   0x6   :  { %p449_p0 = scmp.ne.s32.totalorder %s719_s1, %s448_s24  ;;  %p452_p1 = scmp.lt.u32.totalorder %s448_s24, %s719_s1 }
   0x8   :  { %p454_p2 = pnand %p452_p1, %p449_p0 }
   0xa   :  { %457 = shalt.err (!%p454_p2)
}
   0xb   :  { %s458_s29 = scalar_lea.vmem %s32_s19, 1024  ;;  %p463_p4 = scmp.lt.s32.totalorder %s32_s19, %s32_s19 }
   0xc   :  { %p459_p3 = scmp.ne.s32.totalorder %s32_s19, %s458_s29  ;;  %p464_p5 = scmp.lt.s32.totalorder %s458_s29, %s458_s29 }
   0xe   :  { %p465_p6 = por %p464_p5, %p463_p4 }
  0x10   :  { %p466_p7 = pnand %p465_p6, %p459_p3 }
  0x12   :  { %469 = shalt.err (!%p466_p7)
}
  0x13   :  { %s590_s30 = smov 64   ;;  %s591_s6 = smov 4  }
  0x14   :  { %37 = dma.hbm_to_vmem [thread:$0]  %s719_s1, 1024, %s32_s19, [#allocation6], %s590_s30, %s590_s30, %s591_s6  }
  0x15   :  { %s470_s11 = scalar_lea.hbm %s721_s3, 1024 }
  0x16   :  { %p471_p8 = scmp.ne.s32.totalorder %s721_s3, %s470_s11  ;;  %p474_p9 = scmp.lt.u32.totalorder %s470_s11, %s721_s3 }
  0x18   :  { %p476_p10 = pnand %p474_p9, %p471_p8 }
  0x1a   :  { %479 = shalt.err (!%p476_p10)
}
  0x1b   :  { %s480_s16 = scalar_lea.vmem %s630_s21, 1024  ;;  %p485_p12 = scmp.lt.s32.totalorder %s630_s21, %s630_s21 }
  0x1c   :  { %p481_p11 = scmp.ne.s32.totalorder %s630_s21, %s480_s16  ;;  %p486_p13 = scmp.lt.s32.totalorder %s480_s16, %s480_s16 }
  0x1e   :  { %p487_p0 = por %p486_p13, %p485_p12 }
  0x20   :  { %p488_p1 = pnand %p487_p0, %p481_p11 }
  0x22   :  { %491 = shalt.err (!%p488_p1)
}
  0x23   :  { %59 = dma.hbm_to_vmem [thread:$0]  %s721_s3, 1024, %s630_s21, [#allocation9], %s590_s30, %s590_s30, %s591_s6  }
  0x24   :  { %s592_s18 = smov [#allocation2]   ;;  %s593_s20 = smov [#allocation7]  }
  0x25   :  { %s19_s19 = sshll.u32 %s592_s18, 4  ;;  %s44_s22 = sshll.u32 %s593_s20, 4  ;;  %s20_s19 = int_to_ptr.vmem [resolvable:$true] %s19_s19  ;;  %s45_s22 = int_to_ptr.vmem [resolvable:$true] %s44_s22 }
  0x26   :  { %s492_s25 = scalar_lea.hbm %s718_s0, 128 }
  0x27   :  { %p493_p2 = scmp.ne.s32.totalorder %s718_s0, %s492_s25  ;;  %p496_p3 = scmp.lt.u32.totalorder %s492_s25, %s718_s0 }
  0x29   :  { %p498_p4 = pnand %p496_p3, %p493_p2 }
  0x2b   :  { %501 = shalt.err (!%p498_p4)
}
  0x2c   :  { %s502_s3 = scalar_lea.vmem %s20_s19, 128  ;;  %p507_p6 = scmp.lt.s32.totalorder %s20_s19, %s20_s19 }
  0x2d   :  { %p503_p5 = scmp.ne.s32.totalorder %s20_s19, %s502_s3  ;;  %p508_p7 = scmp.lt.s32.totalorder %s502_s3, %s502_s3 }
  0x2f   :  { %p509_p8 = por %p508_p7, %p507_p6 }
  0x31   :  { %p510_p9 = pnand %p509_p8, %p503_p5 }
  0x33   :  { %513 = shalt.err (!%p510_p9)
}
  0x34   :  { %25 = dma.hbm_to_vmem [thread:$0]  %s718_s0, 128, %s20_s19, [#allocation3], %s590_s30, %s590_s30, %s591_s6  }
  0x35   :  { %s514_s10 = scalar_lea.hbm %s720_s2, 16 }
  0x36   :  { %p515_p10 = scmp.ne.s32.totalorder %s720_s2, %s514_s10  ;;  %p518_p11 = scmp.lt.u32.totalorder %s514_s10, %s720_s2 }
  0x38   :  { %p520_p12 = pnand %p518_p11, %p515_p10 }
  0x3a   :  { %523 = shalt.err (!%p520_p12)
}
  0x3b   :  { %s524_s15 = scalar_lea.vmem %s45_s22, 16  ;;  %s528_s16 = scalar_lea.vmem %s45_s22, 32 }
  0x3c   :  { %p525_p13 = scmp.ne.s32.totalorder %s45_s22, %s524_s15  ;;  %p529_p0 = scmp.lt.s32.totalorder %s45_s22, %s45_s22 }
  0x3d   :  { %p530_p1 = scmp.lt.s32.totalorder %s528_s16, %s524_s15 }
  0x3f   :  { %p531_p2 = por %p530_p1, %p529_p0 }
  0x41   :  { %p532_p3 = pnand %p531_p2, %p525_p13 }
  0x43   :  { %535 = shalt.err (!%p532_p3)
}
  0x44   :  { %47 = dma.hbm_to_vmem [thread:$0]  %s720_s2, 16, %s45_s22, [#allocation6]  }
  0x45   :  { %s594_s6 = smov [#allocation10]   ;;  %s536_s19 = scalar_lea.hbm %s722_s4, 16 }
  0x46   :  { %s66_s1 = sshll.u32 %s594_s6, 4  ;;  %p537_p4 = scmp.ne.s32.totalorder %s722_s4, %s536_s19  ;;  %s67_s1 = int_to_ptr.vmem [resolvable:$true] %s66_s1 }
  0x47   :  { %p540_p5 = scmp.lt.u32.totalorder %s536_s19, %s722_s4 }
  0x49   :  { %p542_p6 = pnand %p540_p5, %p537_p4 }
  0x4b   :  { %545 = shalt.err (!%p542_p6)
}
  0x4c   :  { %s546_s26 = scalar_lea.vmem %s67_s1, 16  ;;  %s550_s2 = scalar_lea.vmem %s67_s1, 32 }
  0x4d   :  { %p547_p7 = scmp.ne.s32.totalorder %s67_s1, %s546_s26  ;;  %p551_p8 = scmp.lt.s32.totalorder %s67_s1, %s67_s1 }
  0x4e   :  { %p552_p9 = scmp.lt.s32.totalorder %s550_s2, %s546_s26 }
  0x50   :  { %p553_p10 = por %p552_p9, %p551_p8 }
  0x52   :  { %p554_p11 = pnand %p553_p10, %p547_p7 }
  0x54   :  { %557 = shalt.err (!%p554_p11)
}
  0x55   :  { %69 = dma.hbm_to_vmem [thread:$0]  %s722_s4, 16, %s67_s1, [#allocation9]  }
  0x56   :  { %580 = dma.done.wait [#allocation3], 128  }
  0x57   :  { %581 = vsyncadd [#allocation3], 4294967168 }
  0x58   :  { %582 = dma.done.wait [#allocation6], 1040  }
  0x59   :  { %583 = vsyncadd [#allocation6], 4294966256 }
  0x5a   :  { %584 = dma.done.wait [#allocation9], 1040  }
  0x5b   :  { %585 = vsyncadd [#allocation9], 4294966256  ;;  %v595_v0 = vmov 0.0   ;;  %vm596_vm0 = vmmov 0   ;;  %v431_v1 = vld [vmem:[#allocation5] sm:$0xff]   ;;  %v432_v2 = vld [vmem:[#allocation5 + $0x8] sm:$0xff]  }
  0x5c   :  { %379 = vmatprep.subr.bf16.mxu0 %v595_v0  ;;  %395 = vmatprep.mubr.msk.bf16.mxu0 %vm596_vm0, %v595_v0  ;;  %v433_v3 = vld [vmem:[#allocation5 + $0x10] sm:$0xff]   ;;  %v440_v4 = vld [vmem:[#allocation8] sm:$0xff]   ;;  %v434_v5 = vld [vmem:[#allocation5 + $0x18] sm:$0xff]   ;;  %s597_s4 = smov [#allocation11]  }
  0x5d   :  { %399 = vmatprep.subr.bf16.mxu1 %v595_v0  ;;  %415 = vmatprep.mubr.msk.bf16.mxu1 %vm596_vm0, %v595_v0  ;;  %v441_v6 = vld [vmem:[#allocation8 + $0x8] sm:$0xff]   ;;  %v435_v7 = vld [vmem:[#allocation5 + $0x20] sm:$0xff]   ;;  %v442_v8 = vld [vmem:[#allocation8 + $0x10] sm:$0xff]   ;;  %s328_s28 = sshll.u32 %s597_s4, 4  ;;  %s329_s28 = int_to_ptr.vmem [resolvable:$true] %s328_s28 }
  0x5e   :  { %380 = vmatpush3.bf16.msra.mxu0 %v431_v1  ;;  %400 = vmatpush3.bf16.msra.mxu1 %v440_v4  ;;  %v436_v9 = vld [vmem:[#allocation5 + $0x28] sm:$0xff]   ;;  %v443_v10 = vld [vmem:[#allocation8 + $0x18] sm:$0xff]   ;;  %v437_v11 = vld [vmem:[#allocation5 + $0x30] sm:$0xff]   ;;  %s558_s29 = scalar_lea.vmem %s329_s28, 256  ;;  %p563_p13 = scmp.lt.s32.totalorder %s329_s28, %s329_s28 }
  0x5f   :  { %381 = vmatprep.subr.bf16.mxu0 %v595_v0  ;;  %401 = vmatprep.subr.bf16.mxu1 %v595_v0  ;;  %v444_v12 = vld [vmem:[#allocation8 + $0x20] sm:$0xff]   ;;  %v438_v13 = vld [vmem:[#allocation5 + $0x38] sm:$0xff]   ;;  %v445_v14 = vld [vmem:[#allocation8 + $0x28] sm:$0xff]   ;;  %p559_p12 = scmp.ne.s32.totalorder %s329_s28, %s558_s29  ;;  %p564_p0 = scmp.lt.s32.totalorder %s558_s29, %s558_s29 }
  0x60   :  { %v439_v15 = vld [vmem:[#allocation2] sm:$0xff]   ;;  %v342_v18 = vld [vmem:[#allocation7] ss:$0 sm:$0xff]  ;;  %v352_v28 = vld [vmem:[#allocation10] ss:$0 sm:$0xff] }
  0x61   :  { %v446_v16 = vld [vmem:[#allocation8 + $0x30] sm:$0xff]   ;;  %v447_v17 = vld [vmem:[#allocation8 + $0x38] sm:$0xff]   ;;  %p565_p1 = por %p564_p0, %p563_p13 }
  0x62   :  { %382 = vmatpush3.bf16.msra.mxu0 %v432_v2  ;;  %402 = vmatpush3.bf16.msra.mxu1 %v441_v6 }
  0x63   :  { %383 = vmatprep.subr.bf16.mxu0 %v595_v0  ;;  %403 = vmatprep.subr.bf16.mxu1 %v595_v0  ;;  %p566_p2 = pnand %p565_p1, %p559_p12 }
  0x66   :  { %384 = vmatpush3.bf16.msra.mxu0 %v433_v3  ;;  %404 = vmatpush3.bf16.msra.mxu1 %v442_v8 }
  0x67   :  { %385 = vmatprep.subr.bf16.mxu0 %v595_v0  ;;  %405 = vmatprep.subr.bf16.mxu1 %v595_v0 }
  0x6a   :  { %386 = vmatpush3.bf16.msra.mxu0 %v434_v5  ;;  %406 = vmatpush3.bf16.msra.mxu1 %v443_v10 }
  0x6b   :  { %387 = vmatprep.subr.bf16.mxu0 %v595_v0  ;;  %407 = vmatprep.subr.bf16.mxu1 %v595_v0 }
  0x6e   :  { %388 = vmatpush3.bf16.msra.mxu0 %v435_v7  ;;  %408 = vmatpush3.bf16.msra.mxu1 %v444_v12 }
  0x6f   :  { %389 = vmatprep.subr.bf16.mxu0 %v595_v0  ;;  %409 = vmatprep.subr.bf16.mxu1 %v595_v0 }
  0x72   :  { %390 = vmatpush3.bf16.msra.mxu0 %v436_v9  ;;  %410 = vmatpush3.bf16.msra.mxu1 %v445_v14 }
  0x73   :  { %391 = vmatprep.subr.bf16.mxu0 %v595_v0  ;;  %411 = vmatprep.subr.bf16.mxu1 %v595_v0 }
  0x76   :  { %392 = vmatpush3.bf16.msra.mxu0 %v437_v11  ;;  %412 = vmatpush3.bf16.msra.mxu1 %v446_v16 }
  0x77   :  { %393 = vmatprep.subr.bf16.mxu0 %v595_v0  ;;  %413 = vmatprep.subr.bf16.mxu1 %v595_v0 }
  0x7a   :  { %394 = vmatpush3.bf16.msra.mxu0 %v438_v13  ;;  %414 = vmatpush3.bf16.msra.mxu1 %v447_v17 }
  0x7d   :  { %396 = vmatmul.mubr.bf16.vlgmr.msra.gmra.mrb[0].mxu0 %v439_v15 }
 0x150   :  { %v199_v19 = vpop.f32.mrb[0].mxu0 }
 0x151   :  { %v200_v20 = vadd.f32 %v342_v18, %v199_v19  ;;  %v397_v21 = vpop.f32.mrb[1].mxu0 }
 0x152   :  { %v202_v22 = vpop.f32.mrb[2].mxu0 }
 0x153   :  { %v203_v23 = vadd.f32 %v342_v18, %v202_v22  ;;  %v398_v24 = vpop.f32.mrb[3].mxu0  ;;  %v206_v25 = vmax.f32 %v200_v20, 0.0 }
 0x155   :  { %v207_v26 = vmax.f32 %v203_v23, 0.0 }
 0x157   :  { %v208_v27 = vpack.c.bf16 %v207_v26, %v206_v25 }
 0x159   :  { %416 = vmatmul.mubr.bf16.vlgmr.msra.gmra.mrb[0].mxu1 %v208_v27 }
 0x22c   :  { %v314_v29 = vpop.f32.mrb[0].mxu1 }
 0x22d   :  { %v315_v30 = vadd.f32 %v352_v28, %v314_v29  ;;  %v417_v31 = vpop.f32.mrb[1].mxu1 }
 0x22e   :  { %v317_v32 = vpop.f32.mrb[2].mxu1 }
 0x22f   :  { %321 = vst [vmem:[#allocation11] sm:$0xff] %v315_v30  ;;  %v318_v33 = vadd.f32 %v352_v28, %v317_v32  ;;  %v418_v34 = vpop.f32.mrb[3].mxu1 }
 0x231   :  { %322 = vst [vmem:[#allocation11 + $0x8] sm:$0xff] %v318_v33 }
 0x232   :  { %569 = shalt.err (!%p566_p2)
}
 0x233   :  { %s570_s7 = scalar_lea.hbm %s723_s5, 256 }
 0x234   :  { %p571_p3 = scmp.ne.s32.totalorder %s723_s5, %s570_s7  ;;  %p574_p4 = scmp.lt.u32.totalorder %s570_s7, %s723_s5 }
 0x236   :  { %p576_p5 = pnand %p574_p4, %p571_p3 }
 0x238   :  { %579 = shalt.err (!%p576_p5)
}
 0x239   :  { %s598_s12 = smov 128   ;;  %s599_s13 = smov 8  }
 0x23a   :  { %334 = dma.vmem_to_hbm [thread:$0]  %s329_s28, 256, %s723_s5, [#allocation4], %s598_s12, %s598_s12, %s599_s13  }
 0x23b   :  { %586 = dma.done.wait [#allocation4], 256  }
 0x23c   :  { %587 = vsyncadd [#allocation4], 4294967040 }
 0x23d   :  { %338 = vsyncpa [#allocation3], 1 }
 0x23e   :  { %339 = vsyncpa [#allocation6], 1 }
 0x23f   :  { %340 = vsyncpa [#allocation9], 1 }
 0x240   :  { %341 = vsyncpa [#allocation4], 1 }

</bundles_post_ra>
